<compile_context>
chip_gen: v7x
topology: tpu7x:2x2x1
jax: 0.10.0
libtpu: 0.0.40
codegen_flags: <defaults>
</compile_context>

<pallas_src>
import functools

import jax
import jax.numpy as jnp
from jax.experimental import pallas as pl
from jax.experimental.pallas import tpu as pltpu

_LANE = 128        # vreg lane width
_SUBLANE = 8       # vreg sublane count (f32)
_MAX_TM = 512      # batch-tile cap (256 under-amortized the per-step overhead)
_MAX_TK = 4096     # contraction-tile cap (keeps the activation block <= 8 MiB)
_VMEM_BUDGET = 24 << 20   # target working set (double-buffered blocks + scratch)
_VMEM_LIMIT = 32 << 20    # scoped-VMEM allowance: safe on v5e/v6e (128 MiB) & v7x (64 MiB)


def _round_up(n, m):
    return ((n + m - 1) // m) * m


def _linear_kernel(x_ref, w_ref, b_ref, o_ref, acc_ref):
    """One (tm, tk) x (tk, 128) MXU step; bias-add + store on the last K step."""
    k = pl.program_id(1)

    @pl.when(k == 0)
    def _():
        acc_ref[...] = jnp.zeros_like(acc_ref)

    # Cast activations to bf16 on the VPU right before the dot (no extra XLA
    # pass over HBM); MXU accumulates in f32.
    acc_ref[...] += jnp.dot(
        x_ref[...].astype(jnp.bfloat16),
        w_ref[...],
        preferred_element_type=jnp.float32,
    )

    @pl.when(k == pl.num_programs(1) - 1)
    def _():
        # f32 bias add (broadcast over rows); lane-dense 128-wide unmasked store.
        o_ref[...] = acc_ref[...] + b_ref[...]


def prepare_linear_params(weight, bias):
    """One-time parameter prep (hoisted out of the forward hot path):
       - transpose torch (num_classes, in_dim) weight -> (in_dim, num_classes)
       - zero-pad the class dim to a multiple of 128 (lane-dense stores)
       - cast the weight to bf16 (halves weight HBM bytes; f32 accumulate).
    Padded columns are zero; the wrapper slices logits back to num_classes.
    """
    num_classes, in_dim = weight.shape
    n_pad = _round_up(num_classes, _LANE)
    w = jnp.zeros((in_dim, n_pad), jnp.bfloat16)
    w = w.at[:, :num_classes].set(weight.T.astype(jnp.bfloat16))
    b = jnp.zeros((1, n_pad), jnp.float32)
    b = b.at[:, :num_classes].set(bias.astype(jnp.float32).reshape(1, num_classes))
    return w, b


def _choose_tiles(B, in_dim):
    """Pick (tm, tk) so blocks fit the VMEM budget and the M grid can shard."""
    # ---- K (contraction) tile ----
    if in_dim <= _MAX_TK or in_dim % _LANE != 0:
        # Small (or not lane-divisible) contraction: keep it fully resident.
        tk = in_dim
    else:
        # Largest multiple of 128 that divides in_dim (exact K grid) and is
        # <= _MAX_TK, so the per-step activation block stays VMEM-friendly.
        tk = _LANE
        d = _LANE
        while d <= _MAX_TK:
            if in_dim % d == 0:
                tk = d
            d += _LANE

    # ---- M (batch) tile ----
    b8 = _round_up(max(B, _SUBLANE), _SUBLANE)
    tm = min(_MAX_TM, b8)
    # Large batches: keep >= 2 M-tiles so the "parallel" axis can use both
    # TensorCores on v7x (no effect on single-TC v5e/v6e).
    if b8 >= 512:
        tm = min(tm, _round_up(pl.cdiv(b8, 2), _SUBLANE))

    def vmem_bytes(tm_, tk_):
        x_blk = 2 * tm_ * tk_ * 4       # f32 activation block, double-buffered
        w_blk = 2 * tk_ * _LANE * 2     # bf16 weight block, double-buffered
        o_blk = 2 * tm_ * _LANE * 4     # f32 output block, double-buffered
        acc = tm_ * _LANE * 4           # f32 accumulator scratch
        bias = 2 * _LANE * 4
        return x_blk + w_blk + o_blk + acc + bias

    while tm > _SUBLANE and vmem_bytes(tm, tk) > _VMEM_BUDGET:
        tm = _round_up(tm // 2, _SUBLANE)
    return tm, tk


@functools.partial(jax.jit, static_argnames=("num_classes",))
def resnet18_predictor_forward(x, w_padded, b_padded, *, num_classes):
    """
    x        : (B, ...) any trailing shape whose product == in_dim (NCHW ok)
    w_padded : (in_dim, n_pad) bf16  -- from prepare_linear_params
    b_padded : (1, n_pad) f32        -- from prepare_linear_params
    returns  : (B, num_classes) float32 logits
    """
    B = x.shape[0]
    x2d = x.reshape(B, -1)            # view-like flatten; no dtype change, no pad
    in_dim = x2d.shape[1]
    n_pad = w_padded.shape[1]

    tm, tk = _choose_tiles(B, in_dim)
    grid_m = pl.cdiv(B, tm)           # partial last M block masked by Pallas
    grid_k = max(1, in_dim // tk)     # tk divides in_dim by construction

    cost = pl.CostEstimate(
        flops=2 * B * in_dim * n_pad,
        transcendentals=0,
        bytes_accessed=(B * in_dim * x2d.dtype.itemsize
                        + in_dim * n_pad * w_padded.dtype.itemsize
                        + n_pad * 4
                        + B * n_pad * 4),
    )

    out_padded = pl.pallas_call(
        _linear_kernel,
        out_shape=jax.ShapeDtypeStruct((B, n_pad), jnp.float32),
        grid=(grid_m, grid_k),
        in_specs=[
            pl.BlockSpec((tm, tk), lambda i, k: (i, k)),       # activations
            pl.BlockSpec((tk, n_pad), lambda i, k: (k, 0)),    # weight (M-invariant)
            pl.BlockSpec((1, n_pad), lambda i, k: (0, 0)),     # bias (grid-invariant)
        ],
        out_specs=pl.BlockSpec((tm, n_pad), lambda i, k: (i, 0)),
        scratch_shapes=[pltpu.VMEM((tm, n_pad), jnp.float32)],
        compiler_params=pltpu.CompilerParams(
            dimension_semantics=("parallel", "arbitrary"),
            vmem_limit_bytes=_VMEM_LIMIT,
        ),
        cost_estimate=cost,
    )(x2d, w_padded, b_padded)

    # Slice padded class columns back to the true logits (rows already exact).
    return out_padded[:, :num_classes]


if __name__ == "__main__":
    # Shapes from the module __init__ defaults: in_dim=512, num_classes=100.
    B, in_dim, num_classes = 4, 512, 100
    key = jax.random.PRNGKey(0)
    kx, kw, kb = jax.random.split(key, 3)

    # Input shaped like a pooled ResNet feature map (B, C, H, W) with
    # C*H*W == in_dim, exercising the x.view(B, -1) flatten.
    x = jax.random.normal(kx, (B, 512, 1, 1), dtype=jnp.float32)

    bound = 1.0 / jnp.sqrt(in_dim)
    weight = jax.random.uniform(kw, (num_classes, in_dim), jnp.float32, -bound, bound)
    bias = jax.random.uniform(kb, (num_classes,), jnp.float32, -bound, bound)

    # One-time parameter prep (NOT per forward call).
    w_padded, b_padded = prepare_linear_params(weight, bias)

    out = resnet18_predictor_forward(x, w_padded, b_padded, num_classes=num_classes)
    jax.block_until_ready(out)

    # Reference check in plain JAX (f32); bf16 weight/activation -> loose tolerance.
    ref = x.reshape(B, -1) @ weight.T + bias
    assert out.shape == (B, num_classes)
    assert jnp.allclose(out, ref, atol=5e-2, rtol=5e-2), float(jnp.max(jnp.abs(out - ref)))

    # TODO(synk): CrossEntropyLoss (y is not None) branch is not part of the
    # module's returned forward path and is not implemented; fusing a
    # softmax/CE epilogue into this kernel is the next win if it is needed.
    print("KERNEL_OK")
</pallas_src>

<mosaic_0001>
module attributes {stable_mosaic.version = 11 : i64} {
  func.func @_linear_kernel(%arg0: i32, %arg1: i32, %arg2: memref<8x512xf32, #tpu.memory_space<vmem>>, %arg3: memref<512x128xbf16, #tpu.memory_space<vmem>>, %arg4: memref<1x128xf32, #tpu.memory_space<vmem>>, %arg5: memref<8x128xf32, #tpu.memory_space<vmem>>, %arg6: memref<8x128xf32, #tpu.memory_space<vmem>>) attributes {dimension_semantics = [#tpu.dimension_semantics<parallel>, #tpu.dimension_semantics<arbitrary>], iteration_bounds = array<i64: 1, 1>, scalar_prefetch = 0 : i64, scratch_operands = 1 : i64, tpu.core_type = #tpu.core_type<tc>, window_params = [{transform_indices = @transform_0, window_bounds = array<i64: 8, 512>}, {transform_indices = @transform_1, window_bounds = array<i64: 512, 128>}, {pipeline_mode = #tpu.pipeline_mode<synchronous>, transform_indices = @transform_2, window_bounds = array<i64: 1, 128>}, {transform_indices = @transform_3, window_bounds = array<i64: 8, 128>}]} {
    %c0_i32 = arith.constant 0 : i32
    %0 = arith.cmpi eq, %arg1, %c0_i32 : i32
    %1 = arith.extui %0 : i1 to i32
    %c0_i32_0 = arith.constant 0 : i32
    %2 = arith.cmpi ne, %1, %c0_i32_0 : i32
    scf.if %2 {
      %cst_10 = arith.constant 0.000000e+00 : f32
      %13 = vector.broadcast %cst_10 : f32 to vector<8x128xf32>
      %c0_11 = arith.constant 0 : index
      %c0_12 = arith.constant 0 : index
      %14 = vector.load %arg6[%c0_11, %c0_12] : memref<8x128xf32, #tpu.memory_space<vmem>>, vector<8x128xf32>
      tpu.vector_store %arg6[%c0_11, %c0_12], %13 {strides = array<i32>} : memref<8x128xf32, #tpu.memory_space<vmem>>, vector<8x128xf32>,
    } else {
    }
    %c0 = arith.constant 0 : index
    %c0_1 = arith.constant 0 : index
    %3 = vector.load %arg6[%c0, %c0_1] : memref<8x128xf32, #tpu.memory_space<vmem>>, vector<8x128xf32>
    %c0_2 = arith.constant 0 : index
    %c0_3 = arith.constant 0 : index
    %4 = vector.load %arg2[%c0_2, %c0_3] : memref<8x512xf32, #tpu.memory_space<vmem>>, vector<8x512xf32>
    %5 = arith.truncf %4 : vector<8x512xf32> to vector<8x512xbf16>
    %c0_4 = arith.constant 0 : index
    %c0_5 = arith.constant 0 : index
    %6 = vector.load %arg3[%c0_4, %c0_5] : memref<512x128xbf16, #tpu.memory_space<vmem>>, vector<512x128xbf16>
    %cst = arith.constant dense<0.000000e+00> : vector<8x128xf32>
    %7 = tpu.matmul %5, %6, %cst {dimension_numbers = #tpu.dot_dimension_numbers<[1], [0], [0], [1], [0, 0, 1, 1], [], []>} : vector<8x512xbf16>, vector<512x128xbf16>, vector<8x128xf32> -> vector<8x128xf32>
    %8 = arith.addf %3, %7 : vector<8x128xf32>
    %c0_6 = arith.constant 0 : index
    %c0_7 = arith.constant 0 : index
    %9 = vector.load %arg6[%c0_6, %c0_7] : memref<8x128xf32, #tpu.memory_space<vmem>>, vector<8x128xf32>
    tpu.vector_store %arg6[%c0_6, %c0_7], %8 {strides = array<i32>} : memref<8x128xf32, #tpu.memory_space<vmem>>, vector<8x128xf32>,
    %c0_i32_8 = arith.constant 0 : i32
    %10 = arith.cmpi eq, %arg1, %c0_i32_8 : i32
    %11 = arith.extui %10 : i1 to i32
    %c0_i32_9 = arith.constant 0 : i32
    %12 = arith.cmpi ne, %11, %c0_i32_9 : i32
    scf.if %12 {
      %c0_10 = arith.constant 0 : index
      %c0_11 = arith.constant 0 : index
      %13 = vector.load %arg6[%c0_10, %c0_11] : memref<8x128xf32, #tpu.memory_space<vmem>>, vector<8x128xf32>
      %c0_12 = arith.constant 0 : index
      %c0_13 = arith.constant 0 : index
      %14 = vector.load %arg4[%c0_12, %c0_13] : memref<1x128xf32, #tpu.memory_space<vmem>>, vector<1x128xf32>
      %15 = vector.broadcast %14 : vector<1x128xf32> to vector<8x128xf32>
      %16 = arith.addf %13, %15 : vector<8x128xf32>
      %c0_14 = arith.constant 0 : index
      %c0_15 = arith.constant 0 : index
      %17 = vector.load %arg5[%c0_14, %c0_15] : memref<8x128xf32, #tpu.memory_space<vmem>>, vector<8x128xf32>
      tpu.vector_store %arg5[%c0_14, %c0_15], %16 {strides = array<i32>} : memref<8x128xf32, #tpu.memory_space<vmem>>, vector<8x128xf32>,
    } else {
    }
    return
  }
  func.func @transform_0(%arg0: i32, %arg1: i32) -> (i32, i32) {
    %c0_i32 = arith.constant 0 : i32
    return %arg0, %arg1 : i32, i32
  }
  func.func @transform_1(%arg0: i32, %arg1: i32) -> (i32, i32) {
    %c0_i32 = arith.constant 0 : i32
    %c0_i32_0 = arith.constant 0 : i32
    return %arg1, %c0_i32 : i32, i32
  }
  func.func @transform_2(%arg0: i32, %arg1: i32) -> (i32, i32) {
    %c0_i32 = arith.constant 0 : i32
    %c0_i32_0 = arith.constant 0 : i32
    %c0_i32_1 = arith.constant 0 : i32
    return %c0_i32, %c0_i32_0 : i32, i32
  }
  func.func @transform_3(%arg0: i32, %arg1: i32) -> (i32, i32) {
    %c0_i32 = arith.constant 0 : i32
    %c0_i32_0 = arith.constant 0 : i32
    return %arg0, %c0_i32 : i32, i32
  }
}

</mosaic_0001>

<bundles_post_ra>
// kernel: resnet18_predictor_forward.1
= control target key start
LH: loop header
LB: loop body
LE: loop exit
PB: predicated region body
PF: predicated region fallthrough
CT: control target
= control target key end

     0   :  { %8 = vsyncpa [#allocation4], 0  ;;  %s660_s0 = inlined_call_operand.vmem [shape: f32[4,512], index: 0, kind: input, shape index: {}]   ;;  %s661_s1 = inlined_call_operand.hbm [shape: bf16[512,128], index: 1, kind: input, shape index: {}]   ;;  %s662_s2 = inlined_call_operand.vmem [shape: f32[1,128], index: 2, kind: input, shape index: {}]   ;;  %s663_s3 = inlined_call_operand.hbm [shape: f32[4,128], index: 3, kind: output, shape index: {}]  }
   0x1   :  { %9 = vsyncpa [#allocation5], 0  ;;  %s591_s12 = smov [#allocation3]   ;;  %s543_s16 = scalar_lea.hbm %s661_s1, 4096 }
   0x2   :  { %s17_s13 = sshll.u32 %s591_s12, 4  ;;  %p544_p0 = scmp.ne.s32.totalorder %s661_s1, %s543_s16  ;;  %s18_s13 = int_to_ptr.vmem [resolvable:$true] %s17_s13 }
   0x3   :  { %p547_p1 = scmp.lt.u32.totalorder %s543_s16, %s661_s1 }
   0x5   :  { %p549_p2 = pnand %p547_p1, %p544_p0 }
   0x7   :  { %552 = shalt.err (!%p549_p2)
}
   0x8   :  { %s553_s21 = scalar_lea.vmem %s18_s13, 4096  ;;  %p558_p4 = scmp.lt.s32.totalorder %s18_s13, %s18_s13 }
   0x9   :  { %p554_p3 = scmp.ne.s32.totalorder %s18_s13, %s553_s21  ;;  %p559_p5 = scmp.lt.s32.totalorder %s553_s21, %s553_s21 }
   0xb   :  { %p560_p6 = por %p559_p5, %p558_p4 }
   0xd   :  { %p561_p7 = pnand %p560_p6, %p554_p3 }
   0xf   :  { %564 = shalt.err (!%p561_p7)
}
  0x10   :  { %s592_s22 = smov 64   ;;  %s593_s23 = smov 4  }
  0x11   :  { %23 = dma.hbm_to_vmem [thread:$0]  %s661_s1, 4096, %s18_s13, [#allocation4], %s592_s22, %s592_s22, %s593_s23  }
  0x12   :  { %587 = dma.done.wait [#allocation4], 4096  }
  0x13   :  { %588 = vsyncadd [#allocation4], 4294963200  ;;  %v505_v0 = vld [vmem:[#allocation3 + $0x40] sm:$0xff]   ;;  %v509_v4 = vld [vmem:[#allocation3 + $0x48] sm:$0xff]  }
  0x14   :  { %v506_v1 = vld [vmem:[#allocation3 + $0xc0] sm:$0xff]   ;;  %457 = vmatprep.subr.bf16.mxu0 %v505_v0  ;;  %v510_v5 = vld [vmem:[#allocation3 + $0xc8] sm:$0xff]   ;;  %v513_v8 = vld [vmem:[#allocation3 + $0x50] sm:$0xff]  }
  0x15   :  { %v507_v2 = vld [vmem:[#allocation3] sm:$0xff]   ;;  %479 = vmatprep.subr.bf16.mxu1 %v506_v1  ;;  %v511_v6 = vld [vmem:[#allocation3 + $0x8] sm:$0xff]   ;;  %v514_v9 = vld [vmem:[#allocation3 + $0xd0] sm:$0xff]  }
  0x16   :  { %v508_v3 = vld [vmem:[#allocation3 + $0x80] sm:$0xff]   ;;  %458 = vmatpush3.bf16.msra.mxu0 %v507_v2  ;;  %v512_v7 = vld [vmem:[#allocation3 + $0x88] sm:$0xff]   ;;  %v515_v10 = vld [vmem:[#allocation3 + $0x10] sm:$0xff]  }
  0x17   :  { %480 = vmatpush3.bf16.msra.mxu1 %v508_v3  ;;  %459 = vmatprep.subr.bf16.mxu0 %v509_v4  ;;  %v516_v11 = vld [vmem:[#allocation3 + $0x90] sm:$0xff]   ;;  %v517_v12 = vld [vmem:[#allocation3 + $0x58] sm:$0xff]   ;;  %v521_v16 = vld [vmem:[#allocation3 + $0x60] sm:$0xff]  }
  0x18   :  { %481 = vmatprep.subr.bf16.mxu1 %v510_v5  ;;  %v518_v13 = vld [vmem:[#allocation3 + $0xd8] sm:$0xff]   ;;  %v522_v17 = vld [vmem:[#allocation3 + $0xe0] sm:$0xff]   ;;  %v525_v20 = vld [vmem:[#allocation3 + $0x68] sm:$0xff]  }
  0x19   :  { %v519_v14 = vld [vmem:[#allocation3 + $0x18] sm:$0xff]   ;;  %v523_v18 = vld [vmem:[#allocation3 + $0x20] sm:$0xff]   ;;  %v526_v21 = vld [vmem:[#allocation3 + $0xe8] sm:$0xff]  }
  0x1a   :  { %460 = vmatpush3.bf16.msra.mxu0 %v511_v6  ;;  %v520_v15 = vld [vmem:[#allocation3 + $0x98] sm:$0xff]   ;;  %v524_v19 = vld [vmem:[#allocation3 + $0xa0] sm:$0xff]   ;;  %v527_v22 = vld [vmem:[#allocation3 + $0x28] sm:$0xff]  }
  0x1b   :  { %482 = vmatpush3.bf16.msra.mxu1 %v512_v7  ;;  %461 = vmatprep.subr.bf16.mxu0 %v513_v8  ;;  %v528_v23 = vld [vmem:[#allocation3 + $0xa8] sm:$0xff]   ;;  %v529_v24 = vld [vmem:[#allocation3 + $0x70] sm:$0xff]   ;;  %v533_v28 = vld [vmem:[#allocation3 + $0x78] sm:$0xff]  }
  0x1c   :  { %483 = vmatprep.subr.bf16.mxu1 %v514_v9  ;;  %v530_v25 = vld [vmem:[#allocation3 + $0xf0] sm:$0xff]   ;;  %v534_v29 = vld [vmem:[#allocation3 + $0xf8] sm:$0xff]   ;;  %v456_v49 = vld [vmem:[%s662_s2] ss:$0 sm:$0xff] }
  0x1d   :  { %v531_v26 = vld [vmem:[#allocation3 + $0x30] sm:$0xff]   ;;  %v535_v30 = vld [vmem:[#allocation3 + $0x38] sm:$0xff]  }
  0x1e   :  { %462 = vmatpush3.bf16.msra.mxu0 %v515_v10  ;;  %v532_v27 = vld [vmem:[#allocation3 + $0xb0] sm:$0xff]   ;;  %v536_v31 = vld [vmem:[#allocation3 + $0xb8] sm:$0xff]  }
  0x1f   :  { %484 = vmatpush3.bf16.msra.mxu1 %v516_v11  ;;  %463 = vmatprep.subr.bf16.mxu0 %v517_v12  ;;  %v537_v32 = vld [vmem:[%s660_s0] ss:$16 sps:$4 sm:$0xff]   ;;  %v539_v33 = vld [vmem:[%s660_s0 + $0x4] ss:$16 sps:$4 sm:$0xff]   ;;  %v540_v35 = vld [vmem:[%s660_s0 + $0x8] ss:$16 sps:$4 sm:$0xff]  }
  0x20   :  { %485 = vmatprep.subr.bf16.mxu1 %v518_v13  ;;  %v52_v34 = vpack.c.bf16 %v537_v32, %v537_v32  ;;  %v542_v36 = vld [vmem:[%s660_s0 + $0xc] ss:$16 sps:$4 sm:$0xff]   ;;  %v53_v37 = vpack.c.bf16 %v539_v33, %v539_v33  ;;  %v54_v38 = vpack.c.bf16 %v540_v35, %v540_v35 }
  0x21   :  { %v55_v39 = vpack.c.bf16 %v542_v36, %v542_v36 }
  0x22   :  { %464 = vmatpush3.bf16.msra.mxu0 %v519_v14  ;;  %344 = vmatprep.mubr.bf16.mxu0 %v53_v37 }
  0x23   :  { %486 = vmatpush3.bf16.msra.mxu1 %v520_v15  ;;  %465 = vmatprep.subr.bf16.mxu0 %v521_v16 }
  0x24   :  { %487 = vmatprep.subr.bf16.mxu1 %v522_v17  ;;  %384 = vmatprep.mubr.bf16.mxu1 %v55_v39 }
  0x26   :  { %466 = vmatpush3.bf16.msra.mxu0 %v523_v18 }
  0x27   :  { %488 = vmatpush3.bf16.msra.mxu1 %v524_v19  ;;  %467 = vmatprep.subr.bf16.mxu0 %v525_v20 }
  0x28   :  { %489 = vmatprep.subr.bf16.mxu1 %v526_v21 }
  0x2a   :  { %468 = vmatpush3.bf16.msra.mxu0 %v527_v22 }
  0x2b   :  { %490 = vmatpush3.bf16.msra.mxu1 %v528_v23  ;;  %469 = vmatprep.subr.bf16.mxu0 %v529_v24 }
  0x2c   :  { %491 = vmatprep.subr.bf16.mxu1 %v530_v25 }
  0x2e   :  { %470 = vmatpush3.bf16.msra.mxu0 %v531_v26 }
  0x2f   :  { %492 = vmatpush3.bf16.msra.mxu1 %v532_v27  ;;  %471 = vmatprep.subr.bf16.mxu0 %v533_v28 }
  0x30   :  { %493 = vmatprep.subr.bf16.mxu1 %v534_v29 }
  0x32   :  { %472 = vmatpush3.bf16.msra.mxu0 %v535_v30 }
  0x33   :  { %494 = vmatpush3.bf16.msra.mxu1 %v536_v31 }
  0x35   :  { %345 = vmatmul.mubr.bf16.vlgmr.msra.gmra.mrb[0].mxu0 %v52_v34 }
  0x36   :  { %385 = vmatmul.mubr.bf16.vlgmr.msra.gmra.mrb[0].mxu1 %v54_v38 }
 0x108   :  { %v473_v40 = vpop.f32.mrb[0].mxu0 }
 0x109   :  { %v495_v41 = vpop.f32.mrb[0].mxu1  ;;  %v474_v42 = vpop.f32.mrb[1].mxu0 }
 0x10a   :  { %v475_v43 = vadd.f32 %v474_v42, %v473_v40  ;;  %v496_v44 = vpop.f32.mrb[1].mxu1  ;;  %v476_v45 = vpop.f32.mrb[2].mxu0 }
 0x10b   :  { %v497_v46 = vadd.f32 %v496_v44, %v495_v41  ;;  %v498_v47 = vpop.f32.mrb[2].mxu1  ;;  %v477_v48 = vpop.f32.mrb[3].mxu0 }
 0x10c   :  { %v499_v50 = vpop.f32.mrb[3].mxu1 }
 0x10d   :  { %v387_v51 = vadd.f32 %v497_v46, %v475_v43 }
 0x10f   :  { %v405_v52 = vadd.f32 %v456_v49, %v387_v51 }
 0x111   :  { %406 = vst [vmem:[#allocation6] sm:$0xff] %v405_v52 }
 0x112   :  { %411 = vsyncadd [#allocation5], 64  ;;  %s594_s0 = smov [#allocation6]  }
 0x113   :  { %s412_s8 = sshll.u32 %s594_s0, 4  ;;  %s413_s8 = int_to_ptr.vmem [resolvable:$true] %s412_s8 }
 0x114   :  { %s565_s9 = scalar_lea.vmem %s413_s8, 64  ;;  %s569_s10 = scalar_lea.vmem %s413_s8, 128 }
 0x115   :  { %p566_p8 = scmp.ne.s32.totalorder %s413_s8, %s565_s9  ;;  %p570_p9 = scmp.lt.s32.totalorder %s413_s8, %s413_s8 }
 0x116   :  { %p571_p10 = scmp.lt.s32.totalorder %s569_s10, %s565_s9 }
 0x118   :  { %p572_p11 = por %p571_p10, %p570_p9 }
 0x11a   :  { %p573_p12 = pnand %p572_p11, %p566_p8 }
 0x11c   :  { %576 = shalt.err (!%p573_p12)
}
 0x11d   :  { %s577_s2 = scalar_lea.hbm %s663_s3, 64 }
 0x11e   :  { %p578_p13 = scmp.ne.s32.totalorder %s663_s3, %s577_s2  ;;  %p581_p0 = scmp.lt.u32.totalorder %s577_s2, %s663_s3 }
 0x120   :  { %p583_p1 = pnand %p581_p0, %p578_p13 }
 0x122   :  { %586 = shalt.err (!%p583_p1)
}
 0x123   :  { %418 = dma.vmem_to_hbm [thread:$0]  %s413_s8, 64, %s663_s3, [#allocation5], %s592_s22, %s592_s22, %s593_s23  }
 0x124   :  { %589 = dma.done.wait [#allocation5], 128  }
 0x125   :  { %590 = vsyncadd [#allocation5], 4294967168 }
 0x126   :  { %422 = vsyncpa [#allocation4], 1 }
 0x127   :  { %423 = vsyncpa [#allocation5], 1 }

</bundles_post_ra>
